<compile_context>
chip_gen: v5e
topology: v5e:2x2
jax: 0.10.0
libtpu: 0.0.40
codegen_flags: <defaults>
</compile_context>

<pallas_src>
import jax
import jax.numpy as jnp
from jax import lax
from jax.experimental import pallas as pl
from jax.experimental.pallas import tpu as pltpu


def _round_up(a, b):
    return (a + b - 1) // b * b


def _grouped_scale_mul_kernel(x_ref, s_ref, o_ref):
    """x_ref: (TR, G*HW) lane-dense activation rows, s_ref: (TR, G) scales.

    Row r of the x block holds G consecutive channels, each channel's HW
    pixels forming a contiguous lane run.  The per-lane scale is therefore
    piecewise-constant with period HW and is rebuilt with a (G-1)-long
    compare/select chain over a lane iota.
    """
    tr, width = x_ref.shape
    g = s_ref.shape[1]
    hw = width // g

    xv = x_ref[...]
    sv = s_ref[...]          # native scale dtype; promotion happens in the mul

    if g == 1:
        scale = sv           # (TR, 1) broadcasts along lanes directly
    else:
        lane = lax.broadcasted_iota(jnp.int32, (tr, width), 1)
        scale = jnp.broadcast_to(sv[:, 0:1], (tr, width))
        for c in range(1, g):
            scale = jnp.where(lane >= c * hw, sv[:, c : c + 1], scale)

    o_ref[...] = (xv * scale).astype(o_ref.dtype)


def _choose_group(nc, hw, *, max_group=8, max_width=8192):
    """Pick G (dividing N*C) maximizing lane density of G*HW, small G preferred."""
    best_g = 1
    best_density = hw / _round_up(hw, 128)
    for g in range(2, max_group + 1):
        if nc % g:
            continue
        width = g * hw
        if width > max_width:
            continue
        density = width / _round_up(width, 128)
        if density > best_density + 1e-9:
            best_g, best_density = g, density
    return best_g


def _choose_row_tiling(rows, width, g, itemsizes, sublane, vmem_budget_bytes):
    """Pick (tile_rows, num_blocks).  Prefers exactly 2 blocks (v7x: 2 TCs)."""
    x_isz, s_isz, o_isz = itemsizes
    width_p = _round_up(width, 128)
    scale_p = _round_up(g, 128)

    def vmem_bytes(tile):
        tp = _round_up(tile, sublane)
        per_x = tp * width_p * x_isz
        per_o = tp * width_p * o_isz
        per_s = tp * scale_p * s_isz
        return 2 * (per_x + per_o + per_s)   # double-buffered

    for nb in range(2, rows + 1):
        if rows % nb:
            continue
        tile = rows // nb
        if tile % sublane == 0 and vmem_bytes(tile) <= vmem_budget_bytes:
            return tile, nb

    # Single full-extent block: always layout-legal regardless of alignment.
    return rows, 1


def channel_scale_mul(x, s, *, vmem_budget_bytes=16 * 1024 * 1024):
    """x: [N, C, H, W], s: [N, C, 1, 1] -> x * s (broadcast), promoted dtype."""
    N, C, H, W = x.shape
    assert s.shape == (N, C, 1, 1)
    NC, HW = N * C, H * W

    out_dtype = jnp.result_type(x.dtype, s.dtype)
    x_isz = jnp.dtype(x.dtype).itemsize
    s_isz = jnp.dtype(s.dtype).itemsize
    o_isz = jnp.dtype(out_dtype).itemsize
    # Sublane packing of the narrowest dtype involved (8 f32, 16 bf16, 32 i8).
    sublane = max(8, 32 // min(x_isz, s_isz, o_isz))

    g = _choose_group(NC, HW)
    rows = NC // g
    width = g * HW

    x2 = x.reshape(rows, width)      # free contiguous regrouping
    s2 = s.reshape(rows, g)          # native dtype; cast/promote in-kernel

    tile, num_blocks = _choose_row_tiling(
        rows, width, g, (x_isz, s_isz, o_isz), sublane, vmem_budget_bytes
    )

    out2 = pl.pallas_call(
        _grouped_scale_mul_kernel,
        out_shape=jax.ShapeDtypeStruct((rows, width), out_dtype),
        grid_spec=pl.GridSpec(
            grid=(num_blocks,),
            in_specs=[
                pl.BlockSpec((tile, width), lambda i: (i, 0)),
                pl.BlockSpec((tile, g), lambda i: (i, 0)),
            ],
            out_specs=pl.BlockSpec((tile, width), lambda i: (i, 0)),
        ),
        compiler_params=pltpu.CompilerParams(
            dimension_semantics=("parallel",),
            vmem_limit_bytes=32 * 1024 * 1024,   # v7x-safe (64 MiB physical)
        ),
    )(x2, s2)

    return out2.reshape(N, C, H, W)


if __name__ == "__main__":
    key = jax.random.PRNGKey(0)
    k1, k2, k3, k4 = jax.random.split(key, 4)

    # Small shape consistent with the module's [1, 3840, 7, 7] * [1, 3840, 1, 1]
    # (N*C divisible by 5 -> exercises the lane-dense grouped path, 2 blocks).
    N, C, H, W = 1, 320, 7, 7
    x774 = jax.random.normal(k1, (N, C, H, W), dtype=jnp.float32)
    x779 = jax.random.normal(k2, (N, C, 1, 1), dtype=jnp.float32)

    out = jax.block_until_ready(channel_scale_mul(x774, x779))
    ref = x774 * x779
    assert out.shape == ref.shape and out.dtype == ref.dtype
    assert jnp.allclose(out, ref, atol=1e-6, rtol=1e-6)

    # Also exercise the single full-extent-block fallback (awkward N*C).
    xb = jax.random.normal(k3, (1, 24, 7, 7), dtype=jnp.float32)
    sb = jax.random.normal(k4, (1, 24, 1, 1), dtype=jnp.float32)
    outb = jax.block_until_ready(channel_scale_mul(xb, sb))
    assert jnp.allclose(outb, xb * sb, atol=1e-6, rtol=1e-6)

    print("KERNEL_OK")
</pallas_src>

<mosaic_0001>
module attributes {stable_mosaic.version = 11 : i64} {
  func.func @_grouped_scale_mul_kernel(%arg0: i32, %arg1: memref<32x245xf32, #tpu.memory_space<vmem>>, %arg2: memref<32x5xf32, #tpu.memory_space<vmem>>, %arg3: memref<32x245xf32, #tpu.memory_space<vmem>>) attributes {dimension_semantics = [#tpu.dimension_semantics<parallel>], iteration_bounds = array<i64: 2>, scalar_prefetch = 0 : i64, scratch_operands = 0 : i64, tpu.core_type = #tpu.core_type<tc>, window_params = [{transform_indices = @transform_0, window_bounds = array<i64: 32, 245>}, {transform_indices = @transform_1, window_bounds = array<i64: 32, 5>}, {transform_indices = @transform_2, window_bounds = array<i64: 32, 245>}]} {
    %c0 = arith.constant 0 : index
    %c0_0 = arith.constant 0 : index
    %0 = vector.load %arg1[%c0, %c0_0] : memref<32x245xf32, #tpu.memory_space<vmem>>, vector<32x245xf32>
    %c0_1 = arith.constant 0 : index
    %c0_2 = arith.constant 0 : index
    %1 = vector.load %arg2[%c0_1, %c0_2] : memref<32x5xf32, #tpu.memory_space<vmem>>, vector<32x5xf32>
    %2 = tpu.iota {dimensions = array<i32: 1>} : vector<32x245xi32>
    %3 = vector.extract_strided_slice %1 {offsets = [0, 0], sizes = [32, 1], strides = [1, 1]} : vector<32x5xf32> to vector<32x1xf32>
    %4 = vector.shape_cast %3 : vector<32x1xf32> to vector<32x1xf32>
    %5 = vector.broadcast %4 : vector<32x1xf32> to vector<32x245xf32>
    %c49_i32 = arith.constant 49 : i32
    %6 = vector.broadcast %c49_i32 : i32 to vector<32x245xi32>
    %7 = arith.cmpi sge, %2, %6 : vector<32x245xi32>
    %8 = vector.extract_strided_slice %1 {offsets = [0, 1], sizes = [32, 1], strides = [1, 1]} : vector<32x5xf32> to vector<32x1xf32>
    %9 = vector.shape_cast %8 : vector<32x1xf32> to vector<32x1xf32>
    %10 = vector.broadcast %9 : vector<32x1xf32> to vector<32x245xf32>
    %11 = arith.select %7, %10, %5 : vector<32x245xi1>, vector<32x245xf32>
    %c98_i32 = arith.constant 98 : i32
    %12 = vector.broadcast %c98_i32 : i32 to vector<32x245xi32>
    %13 = arith.cmpi sge, %2, %12 : vector<32x245xi32>
    %14 = vector.extract_strided_slice %1 {offsets = [0, 2], sizes = [32, 1], strides = [1, 1]} : vector<32x5xf32> to vector<32x1xf32>
    %15 = vector.shape_cast %14 : vector<32x1xf32> to vector<32x1xf32>
    %16 = vector.broadcast %15 : vector<32x1xf32> to vector<32x245xf32>
    %17 = arith.select %13, %16, %11 : vector<32x245xi1>, vector<32x245xf32>
    %c147_i32 = arith.constant 147 : i32
    %18 = vector.broadcast %c147_i32 : i32 to vector<32x245xi32>
    %19 = arith.cmpi sge, %2, %18 : vector<32x245xi32>
    %20 = vector.extract_strided_slice %1 {offsets = [0, 3], sizes = [32, 1], strides = [1, 1]} : vector<32x5xf32> to vector<32x1xf32>
    %21 = vector.shape_cast %20 : vector<32x1xf32> to vector<32x1xf32>
    %22 = vector.broadcast %21 : vector<32x1xf32> to vector<32x245xf32>
    %23 = arith.select %19, %22, %17 : vector<32x245xi1>, vector<32x245xf32>
    %c196_i32 = arith.constant 196 : i32
    %24 = vector.broadcast %c196_i32 : i32 to vector<32x245xi32>
    %25 = arith.cmpi sge, %2, %24 : vector<32x245xi32>
    %26 = vector.extract_strided_slice %1 {offsets = [0, 4], sizes = [32, 1], strides = [1, 1]} : vector<32x5xf32> to vector<32x1xf32>
    %27 = vector.shape_cast %26 : vector<32x1xf32> to vector<32x1xf32>
    %28 = vector.broadcast %27 : vector<32x1xf32> to vector<32x245xf32>
    %29 = arith.select %25, %28, %23 : vector<32x245xi1>, vector<32x245xf32>
    %30 = arith.mulf %0, %29 : vector<32x245xf32>
    %c0_3 = arith.constant 0 : index
    %c0_4 = arith.constant 0 : index
    %31 = vector.load %arg3[%c0_3, %c0_4] : memref<32x245xf32, #tpu.memory_space<vmem>>, vector<32x245xf32>
    tpu.vector_store %arg3[%c0_3, %c0_4], %30 {strides = array<i32>} : memref<32x245xf32, #tpu.memory_space<vmem>>, vector<32x245xf32>,
    return
  }
  func.func @transform_0(%arg0: i32) -> (i32, i32) {
    %c0_i32 = arith.constant 0 : i32
    %c0_i32_0 = arith.constant 0 : i32
    return %arg0, %c0_i32 : i32, i32
  }
  func.func @transform_1(%arg0: i32) -> (i32, i32) {
    %c0_i32 = arith.constant 0 : i32
    %c0_i32_0 = arith.constant 0 : i32
    return %arg0, %c0_i32 : i32, i32
  }
  func.func @transform_2(%arg0: i32) -> (i32, i32) {
    %c0_i32 = arith.constant 0 : i32
    %c0_i32_0 = arith.constant 0 : i32
    return %arg0, %c0_i32 : i32, i32
  }
}

</mosaic_0001>

<bundles_post_ra>
// kernel: tpu_custom_call.1
= control target key start
LH: loop header
LB: loop body
LE: loop exit
PB: predicated region body
PF: predicated region fallthrough
CT: control target
= control target key end

     0   :  { %7 = vsyncpa [#allocation3], 0  ;;  %s835_s0 = inlined_call_operand.hbm [shape: f32[64,245], index: 0, kind: input, shape index: {}]   ;;  %s836_s1 = inlined_call_operand.vmem [shape: f32[64,5], index: 1, kind: input, shape index: {}]   ;;  %s837_s2 = inlined_call_operand.hbm [shape: f32[64,245], index: 2, kind: output, shape index: {}]  }
   0x1   :  { %9 = vsyncpa [#allocation3 + $0x1], 0 }
   0x2   :  { %10 = vsyncpa [#allocation4], 0 }
   0x3   :  { %12 = vsyncpa [#allocation4 + $0x1], 0  ;;  %s659_s9 = smov 0   ;;  %s661_s10 = smov 0  }
   0x4   :  { %s663_s11 = smov 0   ;;  %s665_s12 = smov 0  }
   0x5 LB: > { %s680_s13 = sadd.s32 4294967295, %s633_s12   ;;  %s447_s14 = sadd.s32 4294967294, %s633_s12   ;;  %s633_s12 = sphi %s665_s12, %s847_s12   ;;  %s629_s11 = sphi %s663_s11, %s846_s11   ;;  %s625_s10 = sphi %s661_s10, %s845_s10   ;;  %s621_s9 = sphi %s659_s9, %s844_s9  }
   0x6   : > { %s684_s15 = sadd.s32 1, %s633_s12   ;;  %s25_s16 = sadd.s32 1, %s629_s11 }
   0x7   : > { %s22_s17 = ssub.s32 %s633_s12, %s684_s15  ;;  %p32_p0 = scmp.ne.s32.totalorder %s629_s11, %s625_s10 }
   0x8   : > { %p23_p1 = scmp.eq.s32.totalorder %s22_s17, 0  ;;  %p33_p2 = scmp.eq.s32.totalorder %s633_s12, 0 }
   0x9   : > { %p38_p3 = scmp.ne.s32.totalorder %s625_s10, %s621_s9  ;;  %p39_p4 = scmp.eq.s32.totalorder %s680_s13, 0 }
   0xa   : > { %s696_s18 = scalar_select %p23_p1, %s629_s11, %s25_s16  }
   0xb   : > { %p698_p5 = por %p33_p2, %p32_p0  ;;  %p702_p6 = por %p39_p4, %p38_p3 }
   0xc   : > { %p88_p7 = scmp.eq.s32.totalorder %s680_s13, 1  ;;  %p94_p8 = scmp.eq.s32.totalorder %s447_s14, 1 }
   0xd   : > { %p481_p10 = scmp.lt.s32.totalorder %s633_s12, 2  ;;  %s114_s23 = sand.u32 1, %s629_s11  }
   0xe   : > { %p709_p11 = por %p88_p7, %p32_p0  ;;  %p713_p12 = por %p94_p8, %p38_p3 }
   0xf   : > { %s466_s24 = sshll.u32 %s633_s12, 6  ;;  %s450_s25 = sshll.u32 %s114_s23, 6 }
  0x10   : > { %s124_s28 = scalar_lea.hbm %s835_s0, %s466_s24  ;;  %s118_s30 = scalar_lea.vmem [#allocation2], %s450_s25 }
  0x11   : > { %s125_s29 = sshll.u32 %s124_s28, 4  ;;  %s127_s3 = sshll.u32 %s118_s30, 4  ;;  %s126_s29 = int_to_ptr.hbm [resolvable:$true] %s125_s29  ;;  %s128_s3 = int_to_ptr.vmem [resolvable:$true] %s127_s3 }
  0x12   : > { %p724_p13 = pnand %p481_p10, %p698_p5  ;;  %p454_p0 = scmp.ge.s32.totalorder %s633_s12, 1 }
  0x13   : > { %p144_p1 = scmp.lt.s32.totalorder %s633_s12, 3  ;;  %s115_s5 = scalar_lea.sflag [#allocation3], %s114_s23 }
  0x14   : > { %s537_s6 = sshra.s32 %s126_s29, 4  ;;  %p541_p3 = pneg %p724_p13  ;;  %s538_s6 = int_to_ptr.hbm [resolvable:$true] %s537_s6 }
  0x15   : > { %s539_s7 = scalar_lea.hbm %s538_s6, 64  ;;  %s544_s16 = scalar_lea.hbm %s835_s0, 128 }
  0x16   : > { %p540_p2 = scmp.ne.s32.totalorder %s538_s6, %s539_s7  ;;  %p545_p5 = scmp.lt.s32.totalorder %s538_s6, %s835_s0 }
  0x17   : > { %p546_p8 = scmp.lt.s32.totalorder %s544_s16, %s539_s7 }
  0x18   : > { %p542_p4 = pnand %p541_p3, %p540_p2 }
  0x19   : > { %p547_p10 = por %p546_p8, %p545_p5 }
  0x1a   : > { %p543_p7 = pneg %p542_p4 }
  0x1c   : > { %p548_p9 = pnand %p547_p10, %p543_p7 }
  0x1e   : > { %551 = shalt.err (!%p548_p9)
}
  0x1f   : > { %s635_s23 = smov 256   ;;  %s636_s24 = smov 16  }
  0x20   : > { %476 = dma.hbm_to_vmem [thread:$0]  (!%p724_p13), %s126_s29, 1024, %s128_s3, %s115_s5, %s635_s23, %s635_s23, %s636_s24  }
  0x21   : > { %p145_p2 = pnand %p454_p0, %p144_p1 }
  0x22   : > { %s745_s25 = sand.u32 (!%p145_p2), 1, %s625_s10  }
  0x23   : > { %148 = sbr.rel (%p145_p2) target bundleno = 230 (0xe6), region = 28  ;;  %s455_s26 = sshll.u32 (!%p145_p2), %s745_s25, 6 }
  0x24   : > { %s151_s27 = scalar_lea.sflag (!%p145_p2), [#allocation3], %s745_s25  ;;  %s751_s28 = scalar_lea.vmem (!%p145_p2), [#allocation2], %s455_s26 }
  0x28   : > { %612 = dma.done.wait (%p702_p6), %s151_s27, 1024  }
  0x29   : > { %614 = vsyncadd (%p702_p6), %s151_s27, 4294966272  ;;  %s457_s29 = sshll.u32 %s680_s13, 2  ;;  %v637_v0 = vmov 0   ;;  %v638_v1 = vmov 1   ;;  %v639_v6 = vmov 2   ;;  %v640_v7 = vmov 3  }
  0x2a   : > { %525 = vset.pattern.permute.xlu1 %v637_v0  ;;  %524 = vset.pattern.permute.xlu0 %v637_v0  ;;  %p183_p9 = scmp.lt.s32.totalorder %s457_s29, 7  ;;  %v641_v8 = vmov 4   ;;  %v201_v11 = vlaneseq  ;;  %v189_v16 = vld [vmem:[%s751_s28] sm:$0xff]  ;;  %s766_s20 = scalar_lea.vmem [#allocation5], %s455_s26  ;;  %v191_v30 = vld [vmem:[%s751_s28 + $0x10] sm:$0xff]  ;;  %v190_v44 = vld [vmem:[%s751_s28 + $0x8] sm:$0xff] }
  0x2b   : > { %526 = vset.pattern.permute.xlu2 %v638_v1  ;;  %v193_v25 = vld [vmem:[%s751_s28 + $0x20] sm:$0xff]  ;;  %v195_v31 = vld [vmem:[%s751_s28 + $0x30] sm:$0xff]  ;;  %vm337_vm4 = vcmask 957440   ;;  %v194_v50 = vld [vmem:[%s751_s28 + $0x28] sm:$0xff]  ;;  %s468_s6 = sshll.u32 %s680_s13, 6  ;;  %s359_s16 = sshll.u32 %s766_s20, 4  ;;  %s360_s16 = int_to_ptr.vmem [resolvable:$true] %s359_s16 }
  0x2c   : > { %s849_s29 = smov (!%p183_p9, %s457_s29), 7  ;;  %v202_v12 = vand.u32 127, %v201_v11  ;;  %v192_v54 = vld [vmem:[%s751_s28 + $0x18] sm:$0xff]  ;;  %s358_s14 = scalar_lea.hbm %s837_s2, %s468_s6 }
  0x2d   : > { %s458_s30 = sshll.u32 %s849_s29, 3  ;;  %s361_s17 = sshll.u32 %s358_s14, 4  ;;  %v196_v59 = vld [vmem:[%s751_s28 + $0x38] sm:$0xff]  ;;  %s362_s17 = int_to_ptr.hbm [resolvable:$true] %s361_s17 }
  0x2e   : > { %s186_s5 = scalar_lea.vmem %s836_s1, %s458_s30  ;;  %vm224_vm0 = vcmp.ge.s32.totalorder %v202_v12, 49  ;;  %vm250_vm1 = vcmp.ge.s32.totalorder %v202_v12, 98  ;;  %v203_v40 = vadd.s32 128, %v202_v12  ;;  %s346_s13 = scalar_lea.sflag [#allocation4], %s745_s25 }
  0x2f   : > { %v199_v2 = vld [vmem:[%s186_s5 + $0x10] sm:$0xff]  ;;  %v197_v3 = vld [vmem:[%s186_s5] sm:$0xff]  ;;  %v200_v4 = vld [vmem:[%s186_s5 + $0x18] sm:$0xff]  ;;  %s581_s19 = sshra.s32 %s362_s17, 4  ;;  %s587_s27 = scalar_lea.hbm %s837_s2, 128  ;;  %s582_s19 = int_to_ptr.hbm [resolvable:$true] %s581_s19 }
  0x30   : > { %216 = vperm.xlu1 %525, %v199_v2   ;;  %206 = vperm.xlu0 %524, %v197_v3   ;;  %v198_v5 = vld [vmem:[%s186_s5 + $0x8] sm:$0xff]  ;;  %vm303_vm2 = vcmp.ge.s32.totalorder %v203_v40, 196  ;;  %vm277_vm3 = vcmp.ge.s32.totalorder %v203_v40, 147  ;;  %s583_s23 = scalar_lea.hbm %s582_s19, 64  ;;  %p588_p1 = scmp.lt.s32.totalorder %s582_s19, %s837_s2 }
  0x31   : > { %227 = vperm.xlu2 %526, %v197_v3   ;;  %p584_p6 = scmp.ne.s32.totalorder %s582_s19, %s583_s23  ;;  %p589_p3 = scmp.lt.s32.totalorder %s587_s27, %s583_s23 }
  0x33   : > { %p585_p13 = pnand %p584_p6, %p709_p11  ;;  %p590_p4 = por %p589_p3, %p588_p1 }
  0x35   : > { %p586_p0 = pneg %p585_p13 }
  0x37   : > { %p591_p7 = pnand %p590_p4, %p586_p0 }
  0x38   : > { %221 = vperm.xlu1 %525, %v200_v4   ;;  %211 = vperm.xlu0 %524, %v198_v5  }
  0x39   : > { %231 = vperm.xlu2 %526, %v198_v5  }
  0x40   : > { %528 = vset.pattern.permute.xlu1 %v638_v1  ;;  %527 = vset.pattern.permute.xlu0 %v638_v1 }
  0x41   : > { %239 = vperm.xlu1 %528, %v200_v4   ;;  %235 = vperm.xlu0 %527, %v199_v2  }
  0x42   : > { %529 = vset.pattern.permute.xlu2 %v639_v6 }
  0x43   : > { %253 = vperm.xlu2 %529, %v197_v3  }
  0x49   : > { %530 = vset.pattern.permute.xlu1 %v639_v6  ;;  %531 = vset.pattern.permute.xlu0 %v639_v6 }
  0x4a   : > { %257 = vperm.xlu1 %530, %v198_v5   ;;  %265 = vperm.xlu0 %531, %v200_v4  }
  0x4b   : > { %261 = vperm.xlu2 %529, %v199_v2  }
  0x52   : > { %532 = vset.pattern.permute.xlu1 %v640_v7  ;;  %534 = vset.pattern.permute.xlu0 %v641_v8 }
  0x53   : > { %279 = vperm.xlu1 %532, %v197_v3   ;;  %305 = vperm.xlu0 %534, %v197_v3  }
  0x54   : > { %533 = vset.pattern.permute.xlu2 %v640_v7 }
  0x55   : > { %283 = vperm.xlu2 %533, %v198_v5  }
  0x5b   : > { %287 = vperm.xlu1 %532, %v199_v2  }
  0x5d   : > { %291 = vperm.xlu2 %533, %v200_v4  }
  0x63   : > { %535 = vset.pattern.permute.xlu1 %v641_v8 }
  0x64   : > { %309 = vperm.xlu1 %535, %v198_v5  }
  0x65   : > { %536 = vset.pattern.permute.xlu2 %v641_v8 }
  0x66   : > { %313 = vperm.xlu2 %536, %v199_v2  }
  0x6c   : > { %317 = vperm.xlu1 %535, %v200_v4  }
  0x8b   : > { %v228_v9 = vpop.permute.xlu2 %227 }
  0x93   : > { %v232_v10 = vpop.permute.xlu2 %231 }
  0x9d   : > { %v254_v13 = vpop.permute.xlu2 %253 }
  0xa2   : > { %v217_v14 = vpop.permute.xlu1 %216  ;;  %v207_v15 = vpop.permute.xlu0 %206 }
  0xa3   : > { %v242_v17 = vsel %vm224_vm0, %v228_v9, %v207_v15 }
  0xa4   : > { %v268_v18 = vsel %vm250_vm1, %v254_v13, %v242_v17 }
  0xa5   : > { %v328_v19 = vmul.f32 %v268_v18, %v189_v16  ;;  %v262_v22 = vpop.permute.xlu2 %261 }
  0xa7   : > { %336 = vst [vmem:[%s766_s20] sm:$0xff] %v328_v19 }
  0xaa   : > { %v222_v20 = vpop.permute.xlu1 %221  ;;  %v212_v21 = vpop.permute.xlu0 %211 }
  0xab   : > { %v244_v32 = vsel %vm224_vm0, %v232_v10, %v212_v21 }
  0xaf   : > { %v284_v29 = vpop.permute.xlu2 %283 }
  0xb3   : > { %v240_v23 = vpop.permute.xlu1 %239  ;;  %v236_v24 = vpop.permute.xlu0 %235 }
  0xb4   : > { %v246_v26 = vsel %vm224_vm0, %v236_v24, %v217_v14  ;;  %v248_v33 = vsel %vm224_vm0, %v240_v23, %v222_v20 }
  0xb5   : > { %v272_v27 = vsel %vm250_vm1, %v262_v22, %v246_v26 }
  0xb6   : > { %v332_v28 = vmul.f32 %v272_v27, %v193_v25 }
  0xb7   : > { %v292_v41 = vpop.permute.xlu2 %291 }
  0xb8   : > { %341 = vst [vmem:[%s766_s20 + $0x20] sm:$0xff] %v332_v28 }
  0xbc   : > { %v258_v34 = vpop.permute.xlu1 %257  ;;  %v266_v35 = vpop.permute.xlu0 %265 }
  0xbd   : > { %v270_v36 = vsel %vm250_vm1, %v258_v34, %v244_v32  ;;  %v274_v37 = vsel %vm250_vm1, %v266_v35, %v248_v33  ;;  %v297_v55 = vsel %vm277_vm3, %v284_v29, %v258_v34  ;;  %v301_v60 = vsel %vm277_vm3, %v292_v41, %v266_v35 }
  0xbe   : > { %v330_v38 = vmul.f32 %v270_v36, %v191_v30  ;;  %v334_v39 = vmul.f32 %v274_v37, %v195_v31 }
  0xc0   : > { %339 = vst [vmem:[%s766_s20 + $0x10] sm:$0xff] %v330_v38  ;;  %v314_v48 = vpop.permute.xlu2 %313 }
  0xc1   : > { %343 = vst [vmem:[%s766_s20 + $0x30] sm:$0xff] %v334_v39 }
  0xc5   : > { %v280_v42 = vpop.permute.xlu1 %279  ;;  %v306_v43 = vpop.permute.xlu0 %305 }
  0xc6   : > { %v295_v45 = vsel %vm277_vm3, %v280_v42, %v254_v13 }
  0xc7   : > { %v321_v46 = vsel %vm303_vm2, %v306_v43, %v295_v45 }
  0xc8   : > { %v329_v47 = vmul.f32 %v321_v46, %v190_v44 }
  0xca   : > { %338 = vst.msk [vmem:[%s766_s20 + $0x8] sm:$0xff] %vm337_vm4, %v329_v47 }
  0xcd   : > { %v288_v49 = vpop.permute.xlu1 %287 }
  0xce   : > { %v299_v51 = vsel %vm277_vm3, %v288_v49, %v262_v22 }
  0xcf   : > { %v325_v52 = vsel %vm303_vm2, %v314_v48, %v299_v51 }
  0xd0   : > { %v333_v53 = vmul.f32 %v325_v52, %v194_v50 }
  0xd2   : > { %342 = vst.msk [vmem:[%s766_s20 + $0x28] sm:$0xff] %vm337_vm4, %v333_v53 }
  0xd6   : > { %v310_v56 = vpop.permute.xlu1 %309 }
  0xd7   : > { %v323_v57 = vsel %vm303_vm2, %v310_v56, %v297_v55 }
  0xd8   : > { %v331_v58 = vmul.f32 %v323_v57, %v192_v54 }
  0xda   : > { %340 = vst.msk [vmem:[%s766_s20 + $0x18] sm:$0xff] %vm337_vm4, %v331_v58 }
  0xde   : > { %v318_v61 = vpop.permute.xlu1 %317 }
  0xdf   : > { %v327_v62 = vsel %vm303_vm2, %v318_v61, %v301_v60 }
  0xe0   : > { %v335_v63 = vmul.f32 %v327_v62, %v196_v59 }
  0xe2   : > { %344 = vst.msk [vmem:[%s766_s20 + $0x38] sm:$0xff] %vm337_vm4, %v335_v63 }
  0xe3   : > { %594 = shalt.err (!%p591_p7)
}
  0xe4   : > { %s642_s25 = smov 256   ;;  %s643_s30 = smov 16  }
  0xe5   : > { %471 = dma.vmem_to_hbm [thread:$0]  (%p709_p11), %s360_s16, 1024, %s362_s17, %s346_s13, %s642_s25, %s642_s25, %s643_s30  }
  0xe6 PF: > { %s376_s3 = sand.u32 1, %s621_s9   ;;  %p843_p5 = scmp.ge.s32.totalorder %s633_s12, 2 }
  0xe7   : > { %s377_s4 = scalar_lea.sflag [#allocation4], %s376_s3 }
  0xe8   : > { %p478_p8 = pnand %p843_p5, %p713_p12 }
  0xea   : > { %p479_p10 = pneg %p478_p8 }
  0xec   : > { %616 = dma.done.wait (%p479_p10), %s377_s4, 1024  }
  0xed   : > { %618 = vsyncadd (%p479_p10), %s377_s4, 4294966272  ;;  %p15_p2 = scmp.ge.s32.totalorder %s684_s15, 4   ;;  %s844_s9 = smov %s625_s10 }
  0xee   : > { %s845_s10 = smov %s629_s11  ;;  %s846_s11 = smov %s696_s18 }
  0xef   : > { %s847_s12 = smov %s684_s15  ;;  %17 = sbr.rel (!%p15_p2) target bundleno = 5 (0x5), region = 76 }
  0xf4   :  { %383 = vsyncpa [#allocation3], 1 }
  0xf5   :  { %385 = vsyncpa [#allocation3 + $0x1], 1 }
  0xf6   :  { %386 = vsyncpa [#allocation4], 1 }
  0xf7   :  { %388 = vsyncpa [#allocation4 + $0x1], 1 }

</bundles_post_ra>
